<compile_context>
chip_gen: v7x
topology: tpu7x:2x2x1
jax: 0.10.0
libtpu: 0.0.40
codegen_flags: <defaults>
</compile_context>

<pallas_src>
import functools

import jax
import jax.numpy as jnp
from jax.experimental import pallas as pl
from jax.experimental.pallas import tpu as pltpu

IN_DIM = 1024
HID_DIM = 64
OUT_DIM = 36
HID_PAD = 128   # lane-dense hidden width
OUT_PAD = 128   # lane-dense logits / output width
NEG_INF = -1e30


def fcnet_kernel(x_ref, w1_ref, b1_ref, w2_ref, b2_ref, o_ref):
    # fc1 in bf16 on the MXU, f32 accumulation. Padded hidden units see
    # h_pre = 0 -> sigmoid = 0.5, but the matching w2 rows are zero.
    xb = x_ref[...].astype(jnp.bfloat16)                                 # (TM, 1024)
    h = jnp.dot(xb, w1_ref[...], preferred_element_type=jnp.float32)    # (TM, 128) f32
    h = h + b1_ref[...]
    # Exact sigmoid via a single EUP tanh (no approx reciprocal, no exp(-h) overflow).
    h = 0.5 * (1.0 + jnp.tanh(0.5 * h))

    # fc2 in bf16, f32 accumulation (K=128, N=128 lane-dense). Padded class
    # columns carry bias -1e30 so they underflow to exactly 0 under softmax.
    logits = jnp.dot(h.astype(jnp.bfloat16), w2_ref[...],
                     preferred_element_type=jnp.float32)                # (TM, 128)
    logits = logits + b2_ref[...]

    # Numerically stable softmax with an EXACT divide for the denominator so
    # every row sums to 1 to f32 precision.
    m = jnp.max(logits, axis=-1, keepdims=True)
    e = jnp.exp(logits - m)
    denom = jnp.sum(e, axis=-1, keepdims=True)
    o_ref[...] = e / denom


def _round_up(n, m):
    return ((n + m - 1) // m) * m


@functools.partial(jax.jit, static_argnames=("block_rows",))
def fcnet_forward(x, w1, b1, w2, b2, *, block_rows=1024):
    B = x.shape[0]
    x = x.astype(jnp.float32)

    # --- pad parameters to lane-dense shapes; weights to bf16 (DMA'd once) ---
    w1p = jnp.pad(w1, ((0, 0), (0, HID_PAD - HID_DIM))).astype(jnp.bfloat16)
    b1p = jnp.pad(b1, ((0, 0), (0, HID_PAD - HID_DIM)))                       # f32
    w2p = jnp.pad(w2, ((0, HID_PAD - HID_DIM), (0, OUT_PAD - OUT_DIM))).astype(jnp.bfloat16)
    b2p = jnp.pad(b2, ((0, 0), (0, OUT_PAD - OUT_DIM)), constant_values=NEG_INF)  # f32

    # --- batch tiling: no wrapper-side pad/copy of x for ragged batches ------
    tm = min(block_rows, _round_up(B, 8))     # small batches -> small tile
    grid = (pl.cdiv(B, tm),)                  # partial last block handled by Pallas

    out = pl.pallas_call(
        fcnet_kernel,
        out_shape=jax.ShapeDtypeStruct((B, OUT_PAD), jnp.float32),
        grid=grid,
        in_specs=[
            pl.BlockSpec((tm, IN_DIM), lambda i: (i, 0)),        # x: tiled over batch
            # Constant index maps -> weights/biases DMA'd once, VMEM-resident.
            # TODO(synk): add pipeline_mode=pl.Buffered(1) on these four specs
            # to reclaim the dead double-buffer VMEM when pushing TM toward the
            # 64 MiB per-TC v7x limit.
            pl.BlockSpec((IN_DIM, HID_PAD), lambda i: (0, 0)),   # w1 (bf16)
            pl.BlockSpec((1, HID_PAD), lambda i: (0, 0)),        # b1 (f32)
            pl.BlockSpec((HID_PAD, OUT_PAD), lambda i: (0, 0)),  # w2 (bf16)
            pl.BlockSpec((1, OUT_PAD), lambda i: (0, 0)),        # b2 (f32)
        ],
        out_specs=pl.BlockSpec((tm, OUT_PAD), lambda i: (i, 0)),
        compiler_params=pltpu.CompilerParams(
            dimension_semantics=("parallel",),   # megacore sharding on v7x
            vmem_limit_bytes=32 * 1024 * 1024,   # headroom for TM=1024..2048 f32 x tiles
        ),
    )(x, w1p, b1p, w2p, b2p)

    # Slice away the 92 padded class columns (rows past B never exist: out is (B, 128)).
    return out[:, :OUT_DIM]


def init_params(key):
    """Deterministic init mimicking PyTorch nn.Linear default U(-1/sqrt(in), 1/sqrt(in))."""
    k1, k2, k3, k4 = jax.random.split(key, 4)
    bound1 = 1.0 / jnp.sqrt(float(IN_DIM))
    bound2 = 1.0 / jnp.sqrt(float(HID_DIM))
    # Stored (in_features, out_features); biases kept 2-D for TPU layout.
    w1 = jax.random.uniform(k1, (IN_DIM, HID_DIM), jnp.float32, -bound1, bound1)
    b1 = jax.random.uniform(k2, (1, HID_DIM), jnp.float32, -bound1, bound1)
    w2 = jax.random.uniform(k3, (HID_DIM, OUT_DIM), jnp.float32, -bound2, bound2)
    b2 = jax.random.uniform(k4, (1, OUT_DIM), jnp.float32, -bound2, bound2)
    return w1, b1, w2, b2


def reference_forward(x, w1, b1, w2, b2):
    h = jax.nn.sigmoid(x @ w1 + b1)
    logits = h @ w2 + b2
    return jax.nn.softmax(logits, axis=1)


if __name__ == "__main__":
    key = jax.random.PRNGKey(0)
    kx, kp = jax.random.split(key)

    B = 8  # small test batch (at this size the kernel is launch-latency bound;
           # benchmark with B in the thousands to see the tiling wins)
    x = jax.random.normal(kx, (B, IN_DIM), jnp.float32)
    w1, b1, w2, b2 = init_params(kp)

    out = fcnet_forward(x, w1, b1, w2, b2)
    out = jax.block_until_ready(out)

    # Sanity check against plain-JAX f32 reference (bf16 MXU operands give
    # ~1e-4-level output error; exact softmax divide keeps row sums at 1).
    ref = reference_forward(x, w1, b1, w2, b2)
    assert out.shape == (B, OUT_DIM)
    assert jnp.allclose(out, ref, atol=2e-3), "mismatch vs reference"
    assert jnp.allclose(jnp.sum(out, axis=1), jnp.ones((B,)), atol=1e-3), "rows must sum to 1"

    print("KERNEL_OK")
</pallas_src>

<mosaic_0001>
module attributes {stable_mosaic.version = 11 : i64} {
  func.func @fcnet_kernel(%arg0: i32, %arg1: memref<8x1024xf32, #tpu.memory_space<vmem>>, %arg2: memref<1024x128xbf16, #tpu.memory_space<vmem>>, %arg3: memref<1x128xf32, #tpu.memory_space<vmem>>, %arg4: memref<128x128xbf16, #tpu.memory_space<vmem>>, %arg5: memref<1x128xf32, #tpu.memory_space<vmem>>, %arg6: memref<8x128xf32, #tpu.memory_space<vmem>>) attributes {dimension_semantics = [#tpu.dimension_semantics<parallel>], iteration_bounds = array<i64: 1>, scalar_prefetch = 0 : i64, scratch_operands = 0 : i64, tpu.core_type = #tpu.core_type<tc>, window_params = [{transform_indices = @transform_0, window_bounds = array<i64: 8, 1024>}, {pipeline_mode = #tpu.pipeline_mode<synchronous>, transform_indices = @transform_1, window_bounds = array<i64: 1024, 128>}, {pipeline_mode = #tpu.pipeline_mode<synchronous>, transform_indices = @transform_2, window_bounds = array<i64: 1, 128>}, {pipeline_mode = #tpu.pipeline_mode<synchronous>, transform_indices = @transform_3, window_bounds = array<i64: 128, 128>}, {pipeline_mode = #tpu.pipeline_mode<synchronous>, transform_indices = @transform_4, window_bounds = array<i64: 1, 128>}, {transform_indices = @transform_5, window_bounds = array<i64: 8, 128>}]} {
    %c0 = arith.constant 0 : index
    %c0_0 = arith.constant 0 : index
    %0 = vector.load %arg1[%c0, %c0_0] : memref<8x1024xf32, #tpu.memory_space<vmem>>, vector<8x1024xf32>
    %1 = arith.truncf %0 : vector<8x1024xf32> to vector<8x1024xbf16>
    %c0_1 = arith.constant 0 : index
    %c0_2 = arith.constant 0 : index
    %2 = vector.load %arg2[%c0_1, %c0_2] : memref<1024x128xbf16, #tpu.memory_space<vmem>>, vector<1024x128xbf16>
    %cst = arith.constant dense<0.000000e+00> : vector<8x128xf32>
    %3 = tpu.matmul %1, %2, %cst {dimension_numbers = #tpu.dot_dimension_numbers<[1], [0], [0], [1], [0, 0, 1, 1], [], []>} : vector<8x1024xbf16>, vector<1024x128xbf16>, vector<8x128xf32> -> vector<8x128xf32>
    %c0_3 = arith.constant 0 : index
    %c0_4 = arith.constant 0 : index
    %4 = vector.load %arg3[%c0_3, %c0_4] : memref<1x128xf32, #tpu.memory_space<vmem>>, vector<1x128xf32>
    %5 = vector.broadcast %4 : vector<1x128xf32> to vector<8x128xf32>
    %6 = arith.addf %3, %5 : vector<8x128xf32>
    %cst_5 = arith.constant 5.000000e-01 : f32
    %7 = vector.broadcast %cst_5 : f32 to vector<8x128xf32>
    %8 = arith.mulf %7, %6 : vector<8x128xf32>
    %9 = math.tanh %8 : vector<8x128xf32>
    %cst_6 = arith.constant 1.000000e+00 : f32
    %10 = vector.broadcast %cst_6 : f32 to vector<8x128xf32>
    %11 = arith.addf %10, %9 : vector<8x128xf32>
    %cst_7 = arith.constant 5.000000e-01 : f32
    %12 = vector.broadcast %cst_7 : f32 to vector<8x128xf32>
    %13 = arith.mulf %12, %11 : vector<8x128xf32>
    %14 = arith.truncf %13 : vector<8x128xf32> to vector<8x128xbf16>
    %c0_8 = arith.constant 0 : index
    %c0_9 = arith.constant 0 : index
    %15 = vector.load %arg4[%c0_8, %c0_9] : memref<128x128xbf16, #tpu.memory_space<vmem>>, vector<128x128xbf16>
    %cst_10 = arith.constant dense<0.000000e+00> : vector<8x128xf32>
    %16 = tpu.matmul %14, %15, %cst_10 {dimension_numbers = #tpu.dot_dimension_numbers<[1], [0], [0], [1], [0, 0, 1, 1], [], []>} : vector<8x128xbf16>, vector<128x128xbf16>, vector<8x128xf32> -> vector<8x128xf32>
    %c0_11 = arith.constant 0 : index
    %c0_12 = arith.constant 0 : index
    %17 = vector.load %arg5[%c0_11, %c0_12] : memref<1x128xf32, #tpu.memory_space<vmem>>, vector<1x128xf32>
    %18 = vector.broadcast %17 : vector<1x128xf32> to vector<8x128xf32>
    %19 = arith.addf %16, %18 : vector<8x128xf32>
    %cst_13 = arith.constant dense<0xFF800000> : vector<8xf32>
    %20 = vector.multi_reduction <maximumf>, %19, %cst_13 [1] : vector<8x128xf32> to vector<8xf32>
    %21 = vector.shape_cast %20 : vector<8xf32> to vector<8x1xf32>
    %22 = vector.broadcast %21 : vector<8x1xf32> to vector<8x128xf32>
    %23 = arith.subf %19, %22 : vector<8x128xf32>
    %24 = math.exp %23 : vector<8x128xf32>
    %cst_14 = arith.constant dense<0.000000e+00> : vector<8xf32>
    %25 = vector.multi_reduction <add>, %24, %cst_14 [1] : vector<8x128xf32> to vector<8xf32>
    %26 = vector.shape_cast %25 : vector<8xf32> to vector<8x1xf32>
    %27 = vector.broadcast %26 : vector<8x1xf32> to vector<8x128xf32>
    %28 = arith.divf %24, %27 : vector<8x128xf32>
    %c0_15 = arith.constant 0 : index
    %c0_16 = arith.constant 0 : index
    %29 = vector.load %arg6[%c0_15, %c0_16] : memref<8x128xf32, #tpu.memory_space<vmem>>, vector<8x128xf32>
    tpu.vector_store %arg6[%c0_15, %c0_16], %28 {strides = array<i32>} : memref<8x128xf32, #tpu.memory_space<vmem>>, vector<8x128xf32>,
    return
  }
  func.func @transform_0(%arg0: i32) -> (i32, i32) {
    %c0_i32 = arith.constant 0 : i32
    %c0_i32_0 = arith.constant 0 : i32
    return %arg0, %c0_i32 : i32, i32
  }
  func.func @transform_1(%arg0: i32) -> (i32, i32) {
    %c0_i32 = arith.constant 0 : i32
    %c0_i32_0 = arith.constant 0 : i32
    %c0_i32_1 = arith.constant 0 : i32
    return %c0_i32, %c0_i32_0 : i32, i32
  }
  func.func @transform_2(%arg0: i32) -> (i32, i32) {
    %c0_i32 = arith.constant 0 : i32
    %c0_i32_0 = arith.constant 0 : i32
    %c0_i32_1 = arith.constant 0 : i32
    return %c0_i32, %c0_i32_0 : i32, i32
  }
  func.func @transform_3(%arg0: i32) -> (i32, i32) {
    %c0_i32 = arith.constant 0 : i32
    %c0_i32_0 = arith.constant 0 : i32
    %c0_i32_1 = arith.constant 0 : i32
    return %c0_i32, %c0_i32_0 : i32, i32
  }
  func.func @transform_4(%arg0: i32) -> (i32, i32) {
    %c0_i32 = arith.constant 0 : i32
    %c0_i32_0 = arith.constant 0 : i32
    %c0_i32_1 = arith.constant 0 : i32
    return %c0_i32, %c0_i32_0 : i32, i32
  }
  func.func @transform_5(%arg0: i32) -> (i32, i32) {
    %c0_i32 = arith.constant 0 : i32
    %c0_i32_0 = arith.constant 0 : i32
    return %arg0, %c0_i32 : i32, i32
  }
}

</mosaic_0001>

<bundles_post_ra>
// kernel: fcnet_forward.1
= control target key start
LH: loop header
LB: loop body
LE: loop exit
PB: predicated region body
PF: predicated region fallthrough
CT: control target
= control target key end

     0   :  { %s1444_s0 = inlined_call_operand.vmem [shape: f32[8,1024], index: 0, kind: input, shape index: {}]   ;;  %s1445_s1 = inlined_call_operand.vmem [shape: bf16[1024,128], index: 1, kind: input, shape index: {}]   ;;  %s1446_s2 = inlined_call_operand.vmem [shape: f32[1,128], index: 2, kind: input, shape index: {}]   ;;  %s1447_s3 = inlined_call_operand.vmem [shape: bf16[128,128], index: 3, kind: input, shape index: {}]   ;;  %s1448_s4 = inlined_call_operand.vmem [shape: f32[1,128], index: 4, kind: input, shape index: {}]   ;;  %s1449_s5 = inlined_call_operand.hbm [shape: f32[8,128], index: 5, kind: output, shape index: {}]  }
   0x1   :  { %v1051_v0 = vld [vmem:[%s1445_s1 + $0x40] sm:$0xff]   ;;  %v1055_v4 = vld [vmem:[%s1445_s1 + $0x48] sm:$0xff]   ;;  %v1059_v8 = vld [vmem:[%s1445_s1 + $0x50] sm:$0xff]  }
   0x2   :  { %v1052_v1 = vld [vmem:[%s1445_s1 + $0xc0] sm:$0xff]   ;;  %931 = vmatprep.subr.bf16.mxu0 %v1051_v0  ;;  %v1056_v5 = vld [vmem:[%s1445_s1 + $0xc8] sm:$0xff]   ;;  %v1060_v9 = vld [vmem:[%s1445_s1 + $0xd0] sm:$0xff]  }
   0x3   :  { %v1053_v2 = vld [vmem:[%s1445_s1] sm:$0xff]   ;;  %953 = vmatprep.subr.bf16.mxu1 %v1052_v1  ;;  %v1057_v6 = vld [vmem:[%s1445_s1 + $0x8] sm:$0xff]   ;;  %v1061_v10 = vld [vmem:[%s1445_s1 + $0x10] sm:$0xff]  }
   0x4   :  { %v1054_v3 = vld [vmem:[%s1445_s1 + $0x80] sm:$0xff]   ;;  %932 = vmatpush3.bf16.msra.mxu0 %v1053_v2  ;;  %v1058_v7 = vld [vmem:[%s1445_s1 + $0x88] sm:$0xff]   ;;  %v1062_v11 = vld [vmem:[%s1445_s1 + $0x90] sm:$0xff]  }
   0x5   :  { %954 = vmatpush3.bf16.msra.mxu1 %v1054_v3  ;;  %933 = vmatprep.subr.bf16.mxu0 %v1055_v4  ;;  %v1063_v12 = vld [vmem:[%s1445_s1 + $0x58] sm:$0xff]   ;;  %v1067_v16 = vld [vmem:[%s1445_s1 + $0x60] sm:$0xff]   ;;  %v1071_v20 = vld [vmem:[%s1445_s1 + $0x68] sm:$0xff]  }
   0x6   :  { %955 = vmatprep.subr.bf16.mxu1 %v1056_v5  ;;  %v1064_v13 = vld [vmem:[%s1445_s1 + $0xd8] sm:$0xff]   ;;  %v1068_v17 = vld [vmem:[%s1445_s1 + $0xe0] sm:$0xff]   ;;  %v1072_v21 = vld [vmem:[%s1445_s1 + $0xe8] sm:$0xff]  }
   0x7   :  { %v1065_v14 = vld [vmem:[%s1445_s1 + $0x18] sm:$0xff]   ;;  %v1069_v18 = vld [vmem:[%s1445_s1 + $0x20] sm:$0xff]   ;;  %v1073_v22 = vld [vmem:[%s1445_s1 + $0x28] sm:$0xff]  }
   0x8   :  { %934 = vmatpush3.bf16.msra.mxu0 %v1057_v6  ;;  %v1066_v15 = vld [vmem:[%s1445_s1 + $0x98] sm:$0xff]   ;;  %v1070_v19 = vld [vmem:[%s1445_s1 + $0xa0] sm:$0xff]   ;;  %v1074_v23 = vld [vmem:[%s1445_s1 + $0xa8] sm:$0xff]  }
   0x9   :  { %956 = vmatpush3.bf16.msra.mxu1 %v1058_v7  ;;  %935 = vmatprep.subr.bf16.mxu0 %v1059_v8  ;;  %v1075_v24 = vld [vmem:[%s1445_s1 + $0x70] sm:$0xff]   ;;  %v1079_v28 = vld [vmem:[%s1445_s1 + $0x78] sm:$0xff]   ;;  %v23_v32 = vld [vmem:[%s1444_s0 + $0x8] sm:$0xff] }
   0xa   :  { %957 = vmatprep.subr.bf16.mxu1 %v1060_v9  ;;  %v1076_v25 = vld [vmem:[%s1445_s1 + $0xf0] sm:$0xff]   ;;  %v1080_v29 = vld [vmem:[%s1445_s1 + $0xf8] sm:$0xff]   ;;  %v22_v34 = vld [vmem:[%s1444_s0] sm:$0xff]  ;;  %v31_v35 = vpack.c.bf16 %v23_v32, %v23_v32 }
   0xb   :  { %v1077_v26 = vld [vmem:[%s1445_s1 + $0x30] sm:$0xff]   ;;  %v1081_v30 = vld [vmem:[%s1445_s1 + $0x38] sm:$0xff]   ;;  %v30_v37 = vpack.c.bf16 %v22_v34, %v22_v34  ;;  %v1083_v40 = vld [vmem:[%s1445_s1 + $0x140] sm:$0xff]  }
   0xc   :  { %936 = vmatpush3.bf16.msra.mxu0 %v1061_v10  ;;  %v1078_v27 = vld [vmem:[%s1445_s1 + $0xb0] sm:$0xff]   ;;  %v1082_v31 = vld [vmem:[%s1445_s1 + $0xb8] sm:$0xff]   ;;  %589 = vmatprep.mubr.bf16.mxu0 %v31_v35  ;;  %v1084_v41 = vld [vmem:[%s1445_s1 + $0x1c0] sm:$0xff]  }
   0xd   :  { %958 = vmatpush3.bf16.msra.mxu1 %v1062_v11  ;;  %937 = vmatprep.subr.bf16.mxu0 %v1063_v12  ;;  %v25_v33 = vld [vmem:[%s1444_s0 + $0x18] sm:$0xff]  ;;  %v24_v38 = vld [vmem:[%s1444_s0 + $0x10] sm:$0xff]  ;;  %v1085_v42 = vld [vmem:[%s1445_s1 + $0x100] sm:$0xff]  }
   0xe   :  { %959 = vmatprep.subr.bf16.mxu1 %v1064_v13  ;;  %v33_v36 = vpack.c.bf16 %v25_v33, %v25_v33  ;;  %v32_v39 = vpack.c.bf16 %v24_v38, %v24_v38  ;;  %v1086_v43 = vld [vmem:[%s1445_s1 + $0x180] sm:$0xff]   ;;  %v1087_v44 = vld [vmem:[%s1445_s1 + $0x148] sm:$0xff]   ;;  %v1091_v48 = vld [vmem:[%s1445_s1 + $0x150] sm:$0xff]  }
   0xf   :  { %v1088_v45 = vld [vmem:[%s1445_s1 + $0x1c8] sm:$0xff]   ;;  %v1092_v49 = vld [vmem:[%s1445_s1 + $0x1d0] sm:$0xff]   ;;  %v1095_v52 = vld [vmem:[%s1445_s1 + $0x158] sm:$0xff]  }
  0x10   :  { %938 = vmatpush3.bf16.msra.mxu0 %v1065_v14  ;;  %629 = vmatprep.mubr.bf16.mxu1 %v33_v36  ;;  %v1089_v46 = vld [vmem:[%s1445_s1 + $0x108] sm:$0xff]   ;;  %v1093_v50 = vld [vmem:[%s1445_s1 + $0x110] sm:$0xff]   ;;  %v1096_v53 = vld [vmem:[%s1445_s1 + $0x1d8] sm:$0xff]  }
  0x11   :  { %960 = vmatpush3.bf16.msra.mxu1 %v1066_v15  ;;  %939 = vmatprep.subr.bf16.mxu0 %v1067_v16  ;;  %v1090_v47 = vld [vmem:[%s1445_s1 + $0x188] sm:$0xff]   ;;  %v1094_v51 = vld [vmem:[%s1445_s1 + $0x190] sm:$0xff]   ;;  %v1097_v54 = vld [vmem:[%s1445_s1 + $0x118] sm:$0xff]  }
  0x12   :  { %961 = vmatprep.subr.bf16.mxu1 %v1068_v17  ;;  %v1098_v55 = vld [vmem:[%s1445_s1 + $0x198] sm:$0xff]   ;;  %v1099_v56 = vld [vmem:[%s1445_s1 + $0x160] sm:$0xff]   ;;  %v1103_v60 = vld [vmem:[%s1445_s1 + $0x168] sm:$0xff]  }
  0x13   :  { %v1100_v57 = vld [vmem:[%s1445_s1 + $0x1e0] sm:$0xff]   ;;  %v1104_v61 = vld [vmem:[%s1445_s1 + $0x1e8] sm:$0xff]   ;;  %v1107_v0 = vld [vmem:[%s1445_s1 + $0x170] sm:$0xff]  }
  0x14   :  { %940 = vmatpush3.bf16.msra.mxu0 %v1069_v18  ;;  %v1101_v58 = vld [vmem:[%s1445_s1 + $0x120] sm:$0xff]   ;;  %v1105_v62 = vld [vmem:[%s1445_s1 + $0x128] sm:$0xff]   ;;  %v1108_v1 = vld [vmem:[%s1445_s1 + $0x1f0] sm:$0xff]  }
  0x15   :  { %962 = vmatpush3.bf16.msra.mxu1 %v1070_v19  ;;  %941 = vmatprep.subr.bf16.mxu0 %v1071_v20  ;;  %v1102_v59 = vld [vmem:[%s1445_s1 + $0x1a0] sm:$0xff]   ;;  %v1106_v63 = vld [vmem:[%s1445_s1 + $0x1a8] sm:$0xff]   ;;  %v1109_v2 = vld [vmem:[%s1445_s1 + $0x130] sm:$0xff]  }
  0x16   :  { %963 = vmatprep.subr.bf16.mxu1 %v1072_v21  ;;  %v1110_v3 = vld [vmem:[%s1445_s1 + $0x1b0] sm:$0xff]   ;;  %v1111_v4 = vld [vmem:[%s1445_s1 + $0x178] sm:$0xff]   ;;  %v27_v8 = vld [vmem:[%s1444_s0 + $0x28] sm:$0xff] }
  0x17   :  { %v1112_v5 = vld [vmem:[%s1445_s1 + $0x1f8] sm:$0xff]   ;;  %v35_v10 = vpack.c.bf16 %v27_v8, %v27_v8  ;;  %v26_v12 = vld [vmem:[%s1444_s0 + $0x20] sm:$0xff]  ;;  %v28_v13 = vld [vmem:[%s1444_s0 + $0x30] sm:$0xff] }
  0x18   :  { %942 = vmatpush3.bf16.msra.mxu0 %v1073_v22  ;;  %v1113_v6 = vld [vmem:[%s1445_s1 + $0x138] sm:$0xff]   ;;  %v34_v14 = vpack.c.bf16 %v26_v12, %v26_v12  ;;  %v36_v15 = vpack.c.bf16 %v28_v13, %v28_v13 }
  0x19   :  { %964 = vmatpush3.bf16.msra.mxu1 %v1074_v23  ;;  %943 = vmatprep.subr.bf16.mxu0 %v1075_v24  ;;  %v1114_v7 = vld [vmem:[%s1445_s1 + $0x1b8] sm:$0xff]  }
  0x1a   :  { %965 = vmatprep.subr.bf16.mxu1 %v1076_v25  ;;  %v29_v9 = vld [vmem:[%s1444_s0 + $0x38] sm:$0xff] }
  0x1b   :  { %v37_v11 = vpack.c.bf16 %v29_v9, %v29_v9 }
  0x1c   :  { %944 = vmatpush3.bf16.msra.mxu0 %v1077_v26 }
  0x1d   :  { %966 = vmatpush3.bf16.msra.mxu1 %v1078_v27  ;;  %945 = vmatprep.subr.bf16.mxu0 %v1079_v28 }
  0x1e   :  { %967 = vmatprep.subr.bf16.mxu1 %v1080_v29 }
  0x20   :  { %946 = vmatpush3.bf16.msra.mxu0 %v1081_v30 }
  0x21   :  { %968 = vmatpush3.bf16.msra.mxu1 %v1082_v31  ;;  %975 = vmatprep.subr.bf16.mxu0 %v1083_v40 }
  0x22   :  { %997 = vmatprep.subr.bf16.mxu1 %v1084_v41 }
  0x23   :  { %590 = vmatmul.mubr.bf16.vlgmr.msra.gmra.mrb[0].mxu0 %v30_v37 }
  0x24   :  { %630 = vmatmul.mubr.bf16.vlgmr.msra.gmra.mrb[0].mxu1 %v32_v39  ;;  %976 = vmatpush3.bf16.msra.mxu0 %v1085_v42 }
  0x25   :  { %998 = vmatpush3.bf16.msra.mxu1 %v1086_v43  ;;  %977 = vmatprep.subr.bf16.mxu0 %v1087_v44 }
  0x26   :  { %999 = vmatprep.subr.bf16.mxu1 %v1088_v45  ;;  %669 = vmatprep.mubr.bf16.mxu0 %v35_v10 }
  0x27   :  { %709 = vmatprep.mubr.bf16.mxu1 %v37_v11 }
  0x28   :  { %978 = vmatpush3.bf16.msra.mxu0 %v1089_v46 }
  0x29   :  { %1000 = vmatpush3.bf16.msra.mxu1 %v1090_v47  ;;  %979 = vmatprep.subr.bf16.mxu0 %v1091_v48 }
  0x2a   :  { %1001 = vmatprep.subr.bf16.mxu1 %v1092_v49 }
  0x2c   :  { %980 = vmatpush3.bf16.msra.mxu0 %v1093_v50 }
  0x2d   :  { %1002 = vmatpush3.bf16.msra.mxu1 %v1094_v51  ;;  %981 = vmatprep.subr.bf16.mxu0 %v1095_v52 }
  0x2e   :  { %1003 = vmatprep.subr.bf16.mxu1 %v1096_v53 }
  0x30   :  { %982 = vmatpush3.bf16.msra.mxu0 %v1097_v54 }
  0x31   :  { %1004 = vmatpush3.bf16.msra.mxu1 %v1098_v55  ;;  %983 = vmatprep.subr.bf16.mxu0 %v1099_v56 }
  0x32   :  { %1005 = vmatprep.subr.bf16.mxu1 %v1100_v57 }
  0x34   :  { %984 = vmatpush3.bf16.msra.mxu0 %v1101_v58 }
  0x35   :  { %1006 = vmatpush3.bf16.msra.mxu1 %v1102_v59  ;;  %985 = vmatprep.subr.bf16.mxu0 %v1103_v60 }
  0x36   :  { %1007 = vmatprep.subr.bf16.mxu1 %v1104_v61 }
  0x38   :  { %986 = vmatpush3.bf16.msra.mxu0 %v1105_v62 }
  0x39   :  { %1008 = vmatpush3.bf16.msra.mxu1 %v1106_v63  ;;  %987 = vmatprep.subr.bf16.mxu0 %v1107_v0 }
  0x3a   :  { %1009 = vmatprep.subr.bf16.mxu1 %v1108_v1 }
  0x3c   :  { %988 = vmatpush3.bf16.msra.mxu0 %v1109_v2 }
  0x3d   :  { %1010 = vmatpush3.bf16.msra.mxu1 %v1110_v3  ;;  %989 = vmatprep.subr.bf16.mxu0 %v1111_v4 }
  0x3e   :  { %1011 = vmatprep.subr.bf16.mxu1 %v1112_v5 }
  0x40   :  { %990 = vmatpush3.bf16.msra.mxu0 %v1113_v6 }
  0x41   :  { %1012 = vmatpush3.bf16.msra.mxu1 %v1114_v7 }
  0x43   :  { %670 = vmatmul.mubr.bf16.vlgmr.msra.gmra.mrb[4].mxu0 %v34_v14 }
  0x44   :  { %710 = vmatmul.mubr.bf16.vlgmr.msra.gmra.mrb[4].mxu1 %v36_v15 }
  0x45   :  { %10 = vsyncpa [#allocation3], 0  ;;  %v1115_v16 = vld [vmem:[%s1447_s3] sm:$0xff]   ;;  %v1153_v17 = vmov 0.0   ;;  %v1116_v18 = vld [vmem:[%s1447_s3 + $0x8] sm:$0xff]   ;;  %vm1154_vm0 = vmmov 0  }
  0x46   :  { %1028 = vmatprep.subr.bf16.mxu0 %v1153_v17  ;;  %v1117_v19 = vld [vmem:[%s1447_s3 + $0x10] sm:$0xff]   ;;  %v1118_v20 = vld [vmem:[%s1447_s3 + $0x18] sm:$0xff]   ;;  %v1119_v21 = vld [vmem:[%s1447_s3 + $0x20] sm:$0xff]   ;;  %1044 = vmatprep.mubr.msk.bf16.mxu0 %vm1154_vm0, %v1153_v17  ;;  %s1155_s28 = smov [#allocation2]  }
  0x47   :  { %1029 = vmatpush3.bf16.msra.mxu0 %v1115_v16  ;;  %v1120_v22 = vld [vmem:[%s1447_s3 + $0x28] sm:$0xff]   ;;  %v1121_v23 = vld [vmem:[%s1447_s3 + $0x30] sm:$0xff]   ;;  %v1122_v24 = vld [vmem:[%s1447_s3 + $0x38] sm:$0xff]   ;;  %s849_s29 = sshll.u32 %s1155_s28, 4  ;;  %s850_s29 = int_to_ptr.vmem [resolvable:$true] %s849_s29 }
  0x48   :  { %1030 = vmatprep.subr.bf16.mxu0 %v1153_v17  ;;  %v857_v27 = vld [vmem:[%s1446_s2] ss:$0 sm:$0xff]  ;;  %p1134_p1 = scmp.lt.s32.totalorder %s850_s29, %s850_s29 }
  0x49   :  { %v922_v55 = vld [vmem:[%s1448_s4] ss:$0 sm:$0xff]  ;;  %s1129_s4 = scalar_lea.vmem %s850_s29, 128 }
  0x4a   :  { %p1130_p0 = scmp.ne.s32.totalorder %s850_s29, %s1129_s4  ;;  %p1135_p2 = scmp.lt.s32.totalorder %s1129_s4, %s1129_s4 }
  0x4b   :  { %1031 = vmatpush3.bf16.msra.mxu0 %v1116_v18 }
  0x4c   :  { %1032 = vmatprep.subr.bf16.mxu0 %v1153_v17  ;;  %p1136_p3 = por %p1135_p2, %p1134_p1 }
  0x4e   :  { %p1137_p4 = pnand %p1136_p3, %p1130_p0 }
  0x4f   :  { %1033 = vmatpush3.bf16.msra.mxu0 %v1117_v19 }
  0x50   :  { %1034 = vmatprep.subr.bf16.mxu0 %v1153_v17 }
  0x53   :  { %1035 = vmatpush3.bf16.msra.mxu0 %v1118_v20 }
  0x54   :  { %1036 = vmatprep.subr.bf16.mxu0 %v1153_v17 }
  0x57   :  { %1037 = vmatpush3.bf16.msra.mxu0 %v1119_v21 }
  0x58   :  { %1038 = vmatprep.subr.bf16.mxu0 %v1153_v17 }
  0x5b   :  { %1039 = vmatpush3.bf16.msra.mxu0 %v1120_v22 }
  0x5c   :  { %1040 = vmatprep.subr.bf16.mxu0 %v1153_v17 }
  0x5f   :  { %1041 = vmatpush3.bf16.msra.mxu0 %v1121_v23 }
  0x60   :  { %1042 = vmatprep.subr.bf16.mxu0 %v1153_v17 }
  0x63   :  { %1043 = vmatpush3.bf16.msra.mxu0 %v1122_v24 }
  0xf6   :  { %v947_v25 = vpop.f32.mrb[0].mxu0 }
  0xf7   :  { %v969_v26 = vpop.f32.mrb[0].mxu1  ;;  %v948_v28 = vpop.f32.mrb[1].mxu0 }
  0xf8   :  { %v970_v29 = vpop.f32.mrb[1].mxu1  ;;  %v949_v30 = vadd.f32 %v948_v28, %v947_v25  ;;  %v950_v32 = vpop.f32.mrb[2].mxu0 }
  0xf9   :  { %v971_v31 = vadd.f32 %v970_v29, %v969_v26  ;;  %v972_v33 = vpop.f32.mrb[2].mxu1  ;;  %v951_v34 = vpop.f32.mrb[3].mxu0 }
  0xfa   :  { %v973_v35 = vpop.f32.mrb[3].mxu1  ;;  %v592_v36 = vadd.f32 %v949_v30, %v857_v27 }
  0xfc   :  { %v632_v37 = vadd.f32 %v971_v31, %v592_v36 }
 0x116   :  { %v991_v38 = vpop.f32.mrb[4].mxu0 }
 0x117   :  { %v1013_v39 = vpop.f32.mrb[4].mxu1  ;;  %v992_v40 = vpop.f32.mrb[5].mxu0 }
 0x118   :  { %v993_v41 = vadd.f32 %v992_v40, %v991_v38  ;;  %v1014_v42 = vpop.f32.mrb[5].mxu1  ;;  %v994_v43 = vpop.f32.mrb[6].mxu0 }
 0x119   :  { %v1015_v44 = vadd.f32 %v1014_v42, %v1013_v39  ;;  %v1016_v45 = vpop.f32.mrb[6].mxu1  ;;  %v995_v46 = vpop.f32.mrb[7].mxu0 }
 0x11a   :  { %v672_v47 = vadd.f32 %v993_v41, %v632_v37  ;;  %v1017_v48 = vpop.f32.mrb[7].mxu1 }
 0x11c   :  { %v712_v49 = vadd.f32 %v1015_v44, %v672_v47 }
 0x11e   :  { %v717_v50 = vmul.f32 0.5, %v712_v49 }
 0x120   :  { %1123 = vtanh.f32 %v717_v50 }
 0x12a   :  { %v1124_v51 = vpop.eup %1123 }
 0x12b   :  { %v719_v52 = vadd.f32 1.0, %v1124_v51 }
 0x12d   :  { %v720_v53 = vmul.f32 0.5, %v719_v52 }
 0x12f   :  { %v721_v54 = vpack.c.bf16 %v720_v53, %v720_v53 }
 0x131   :  { %1045 = vmatmul.mubr.bf16.vlgmr.msra.gmra.mrb[8].mxu0 %v721_v54 }
 0x204   :  { %v827_v56 = vpop.f32.mrb[8].mxu0 }
 0x205   :  { %v828_v57 = vadd.f32 %v922_v55, %v827_v56  ;;  %v1046_v58 = vpop.f32.mrb[9].mxu0 }
 0x206   :  { %v830_v59 = vpop.f32.mrb[10].mxu0 }
 0x207   :  { %833 = vmax.xlane.f32.xlu0 %v828_v57  ;;  %v1047_v60 = vpop.f32.mrb[11].mxu0 }
 0x294   :  { %v834_v61 = vpop.xlane.xlu0 %833 }
 0x295   :  { %v835_v62 = vsub.f32 %v828_v57, %v834_v61 }
 0x297   :  { %v836_v63 = vmul.f32 1.442695, %v835_v62 }
 0x299   :  { %1125 = vpow2.f32 %v836_v63 }
 0x2a3   :  { %v1126_v0 = vpop.eup %1125 }
 0x2a4   :  { %838 = vadd.xlane.f32.xlu0 %v1126_v0 }
 0x331   :  { %v839_v1 = vpop.xlane.xlu0 %838 }
 0x332   :  { %1127 = vrcp.f32 %v839_v1 }
 0x33c   :  { %v1128_v2 = vpop.eup %1127 }
 0x33d   :  { %v841_v3 = vmul.f32 %v1128_v2, %v1126_v0 }
 0x33f   :  { %842 = vst [vmem:[#allocation2] sm:$0xff] %v841_v3 }
 0x340   :  { %1140 = shalt.err (!%p1137_p4)
}
 0x341   :  { %s1141_s7 = scalar_lea.hbm %s1449_s5, 128 }
 0x342   :  { %p1142_p5 = scmp.ne.s32.totalorder %s1449_s5, %s1141_s7  ;;  %p1145_p6 = scmp.lt.u32.totalorder %s1141_s7, %s1449_s5 }
 0x344   :  { %p1147_p7 = pnand %p1145_p6, %p1142_p5 }
 0x346   :  { %1150 = shalt.err (!%p1147_p7)
}
 0x347   :  { %852 = dma.vmem_to_hbm [thread:$0]  %s850_s29, 128, %s1449_s5, [#allocation3]  }
 0x348   :  { %1151 = dma.done.wait [#allocation3], 128  }
 0x349   :  { %1152 = vsyncadd [#allocation3], 4294967168 }
 0x34a   :  { %856 = vsyncpa [#allocation3], 1 }

</bundles_post_ra>
